<compile_context>
chip_gen: v7x
topology: tpu7x:2x2x1
jax: 0.10.0
libtpu: 0.0.40
codegen_flags: <defaults>
</compile_context>

<pallas_src>
import math
from functools import lru_cache

import jax
import jax.numpy as jnp
from jax.experimental import pallas as pl
from jax.experimental.pallas import tpu as pltpu


_MiB = 1024 * 1024
_MAX_LANE_WIDTH = 32768          # widest folded lane row we will emit


def _tpu_generation() -> str:
    try:
        kind = jax.devices()[0].device_kind.lower()
    except Exception:
        return "unknown"
    if "v7" in kind or "7x" in kind:
        return "v7x"
    if "v6" in kind:
        return "v6e"
    if "v5" in kind:
        return "v5"
    return "unknown"


@lru_cache(maxsize=1)
def _tpu_config():
    gen = _tpu_generation()
    if gen == "v7x":
        # 64 MiB/TC VMEM, ~3.2 TB/s HBM: big tiles, shard rows across both TCs.
        return dict(tile_bytes=16 * _MiB, vmem_limit_bytes=40 * _MiB,
                    core_parallel=True, out_buffers=2, tiny_bytes=2 * _MiB)
    if gen == "v6e":
        # 128 MiB VMEM, ~1.4 TB/s HBM: 12 MiB tiles, 3 outbound buffers.
        return dict(tile_bytes=12 * _MiB, vmem_limit_bytes=64 * _MiB,
                    core_parallel=False, out_buffers=3, tiny_bytes=1 * _MiB)
    if gen == "v5":
        # v5e (~0.8 TB/s): 4 MiB tiles already have <7% step overhead.
        return dict(tile_bytes=4 * _MiB, vmem_limit_bytes=32 * _MiB,
                    core_parallel=False, out_buffers=3, tiny_bytes=1 * _MiB)
    return dict(tile_bytes=8 * _MiB, vmem_limit_bytes=32 * _MiB,
                core_parallel=False, out_buffers=2, tiny_bytes=1 * _MiB)


def _broadcast_kernel(param_ref, out_ref):
    # param_ref: (1, lane_width) resident block (constant index map -> fetched
    # once); out_ref: (tile_rows, lane_width).  The sublane broadcast is the
    # whole "compute" and overlaps the previous tile's HBM writeback DMA,
    # which is the real bottleneck (pure streaming store).
    out_ref[...] = jnp.broadcast_to(param_ref[...], out_ref.shape)


def _sublane_packing(dtype) -> int:
    # 8 rows for 4-byte dtypes, 16 for 2-byte (bf16), 32 for 1-byte (int8/fp8).
    return max(8, 32 // jnp.dtype(dtype).itemsize)


def _pick_row_tile(num_rows: int, row_bytes: int, target_bytes: int,
                   packing: int) -> int:
    """Largest packing-aligned row tile <= num_rows targeting ~target_bytes."""
    if num_rows <= packing:
        return num_rows                                   # single full block
    by_bytes = max(packing,
                   (target_bytes // max(row_bytes, 1)) // packing * packing)
    by_rows = (num_rows // packing) * packing
    return max(packing, min(by_bytes, by_rows))


def _choose_fold(rows: int, n_dim_out: int, packing: int):
    """Pick reps so the flat output is written as (rows//reps, reps*n_dim_out)
    with a lane width that is a multiple of 128.  Returns None if impossible."""
    r0 = 128 // math.gcd(n_dim_out, 128)    # minimal phase-preserving fold
    max_reps = _MAX_LANE_WIDTH // n_dim_out
    if max_reps < r0:
        return None
    cands = set()
    i = 1
    while i * i <= rows:
        if rows % i == 0:
            for d in (i, rows // i):
                if d % r0 == 0 and d <= max_reps:
                    cands.add(d)
        i += 1
    if not cands:
        return None

    def score(r):
        n_rows = rows // r
        # Prefer: folded row count a multiple of the sublane packing, then at
        # least one full sublane group, then the widest lane row (wider rows
        # measured fastest up to ~32K lanes -> fewer sublane broadcasts,
        # fully unmasked stores).
        return (n_rows % packing == 0, n_rows >= packing, r)

    return max(cands, key=score)


def _pallas_broadcast(param_row: jax.Array, num_rows: int, cfg: dict) -> jax.Array:
    """Broadcast param_row (shape (1, L)) to (num_rows, L) with a Pallas kernel."""
    lane_width = param_row.shape[-1]
    dtype = param_row.dtype
    itemsize = jnp.dtype(dtype).itemsize
    packing = _sublane_packing(dtype)
    tile_rows = _pick_row_tile(num_rows, lane_width * itemsize,
                               cfg["tile_bytes"], packing)
    grid0 = pl.cdiv(num_rows, tile_rows)

    out_bytes = num_rows * lane_width * itemsize
    # Pure-bytes op: flops = 0; the param hits HBM once (resident afterwards).
    cost = pl.CostEstimate(flops=0, transcendentals=0,
                           bytes_accessed=out_bytes + lane_width * itemsize)

    def build(dim_sem, out_buffers):
        out_kwargs = {}
        if out_buffers != 2:
            out_kwargs["pipeline_mode"] = pl.Buffered(out_buffers)
        return pl.pallas_call(
            _broadcast_kernel,
            out_shape=jax.ShapeDtypeStruct((num_rows, lane_width), dtype),
            grid_spec=pltpu.PrefetchScalarGridSpec(
                num_scalar_prefetch=0,
                grid=(grid0,),
                in_specs=[
                    # Constant block index -> the tiny param row is DMA'd once
                    # and stays resident across all grid steps.
                    pl.BlockSpec((1, lane_width), lambda i: (0, 0)),
                ],
                out_specs=pl.BlockSpec((tile_rows, lane_width),
                                       lambda i: (i, 0), **out_kwargs),
            ),
            compiler_params=pltpu.CompilerParams(
                dimension_semantics=(dim_sem,),
                vmem_limit_bytes=cfg["vmem_limit_bytes"],
            ),
            cost_estimate=cost,
        )

    preferred_sem = pltpu.CORE_PARALLEL if cfg["core_parallel"] else pltpu.PARALLEL
    try:
        return build(preferred_sem, cfg["out_buffers"])(param_row)
    except Exception:
        # Conservative retry (plain parallel grid, default double buffering)
        # in case CORE_PARALLEL / Buffered(3) are rejected by this toolchain.
        return build(pltpu.PARALLEL, 2)(param_row)


def identity_layer_forward(
    x: jax.Array,
    shared_output: jax.Array,
    *,
    tiny_output_xla_fallback: bool = True,
) -> jax.Array:
    """Pallas equivalent of IdentityLayer.forward.

    x: any-rank array; only its leading shape matters (values are ignored).
    shared_output: (n_dim_out,) parameter.
    Returns x.shape[:-1] + (n_dim_out,) with dtype of shared_output.
    """
    n_dim_out = shared_output.shape[0]
    lead_shape = x.shape[:-1]
    out_shape = lead_shape + (n_dim_out,)
    dtype = shared_output.dtype
    itemsize = jnp.dtype(dtype).itemsize
    packing = _sublane_packing(dtype)
    rows = math.prod(lead_shape)          # == 1 for empty lead_shape
    total = rows * n_dim_out
    cfg = _tpu_config()

    def xla_broadcast():
        return jnp.broadcast_to(
            shared_output.reshape((1,) * len(lead_shape) + (n_dim_out,)),
            out_shape)

    # Degenerate / empty outputs: nothing for a kernel to do.
    if total == 0:
        return xla_broadcast()

    # Below ~1-2 MiB the fixed pallas_call launch + DMA setup exceeds the
    # copy itself; the plain XLA broadcast is strictly faster.
    if tiny_output_xla_fallback and total * itemsize < cfg["tiny_bytes"]:
        return xla_broadcast()

    reps = _choose_fold(rows, n_dim_out, packing)
    if reps is not None:
        lane_width = reps * n_dim_out
        # Pre-tiling the (tiny) parameter to one lane-dense row is layout
        # plumbing (<= 32K elements); the real broadcast happens in the kernel.
        param_row = jnp.tile(shared_output, reps).reshape(1, lane_width)
        out_flat = _pallas_broadcast(param_row, rows // reps, cfg)
    else:
        # No phase-preserving fold exists (e.g. odd n_dim_out with no suitable
        # divisor of rows): fall back to the natural (rows, n_dim_out) layout.
        # Correct, just lane-sparse when n_dim_out is small / not 128-aligned.
        param_row = shared_output.reshape(1, n_dim_out)
        out_flat = _pallas_broadcast(param_row, rows, cfg)

    return out_flat.reshape(out_shape)


if __name__ == "__main__":
    key = jax.random.PRNGKey(0)

    # ---- Primary check: lane-dense Pallas path (x values are irrelevant) ----
    n_dim_out = 32
    x = jax.random.normal(key, (2, 4, 16, 16), dtype=jnp.float32)
    # PyTorch __init__ uses torch.zeros(n_dim_out); use a non-zero vector so
    # the broadcast is observable in the check.
    shared_output = (jnp.arange(n_dim_out, dtype=jnp.float32) / n_dim_out) - 0.5

    out = identity_layer_forward(x, shared_output, tiny_output_xla_fallback=False)
    out = jax.block_until_ready(out)
    ref = jnp.broadcast_to(shared_output.reshape(1, 1, 1, n_dim_out),
                           x.shape[:-1] + (n_dim_out,))
    assert out.shape == x.shape[:-1] + (n_dim_out,), out.shape
    assert out.dtype == jnp.float32
    assert jnp.array_equal(out, ref)

    # ---- Secondary check: non-foldable fallback layout path -----------------
    n2 = 33                                  # odd -> no phase-preserving fold
    x2 = jax.random.normal(key, (2, 4, 7), dtype=jnp.float32)
    p2 = jnp.linspace(-1.0, 1.0, n2, dtype=jnp.float32)
    out2 = identity_layer_forward(x2, p2, tiny_output_xla_fallback=False)
    out2 = jax.block_until_ready(out2)
    ref2 = jnp.broadcast_to(p2.reshape(1, 1, n2), (2, 4, n2))
    assert out2.shape == (2, 4, n2), out2.shape
    assert jnp.array_equal(out2, ref2)

    # ---- Third check: bf16 param exercises dtype-aware sublane packing ------
    n3 = 128
    x3 = jax.random.normal(key, (2, 24, 4), dtype=jnp.float32)
    p3 = jnp.linspace(-2.0, 2.0, n3).astype(jnp.bfloat16)
    out3 = identity_layer_forward(x3, p3, tiny_output_xla_fallback=False)
    out3 = jax.block_until_ready(out3)
    ref3 = jnp.broadcast_to(p3.reshape(1, 1, n3), (2, 24, n3))
    assert out3.shape == (2, 24, n3), out3.shape
    assert out3.dtype == jnp.bfloat16
    assert jnp.array_equal(out3, ref3)

    print("KERNEL_OK")
</pallas_src>

<mosaic_0001>
module attributes {stable_mosaic.version = 11 : i64} {
  func.func @_broadcast_kernel(%arg0: i32, %arg1: memref<1x512xf32, #tpu.memory_space<vmem>>, %arg2: memref<8x512xf32, #tpu.memory_space<vmem>>) attributes {dimension_semantics = [#tpu.dimension_semantics<parallel>], iteration_bounds = array<i64: 1>, scalar_prefetch = 0 : i64, scratch_operands = 0 : i64, tpu.core_type = #tpu.core_type<tc>, window_params = [{pipeline_mode = #tpu.pipeline_mode<synchronous>, transform_indices = @transform_0, window_bounds = array<i64: 1, 512>}, {transform_indices = @transform_1, window_bounds = array<i64: 8, 512>}]} {
    %c0 = arith.constant 0 : index
    %c0_0 = arith.constant 0 : index
    %0 = vector.load %arg1[%c0, %c0_0] : memref<1x512xf32, #tpu.memory_space<vmem>>, vector<1x512xf32>
    %1 = vector.shape_cast %0 : vector<1x512xf32> to vector<1x512xf32>
    %2 = vector.broadcast %1 : vector<1x512xf32> to vector<8x512xf32>
    %c0_1 = arith.constant 0 : index
    %c0_2 = arith.constant 0 : index
    %3 = vector.load %arg2[%c0_1, %c0_2] : memref<8x512xf32, #tpu.memory_space<vmem>>, vector<8x512xf32>
    tpu.vector_store %arg2[%c0_1, %c0_2], %2 {strides = array<i32>} : memref<8x512xf32, #tpu.memory_space<vmem>>, vector<8x512xf32>,
    return
  }
  func.func @transform_0(%arg0: i32) -> (i32, i32) {
    %c0_i32 = arith.constant 0 : i32
    %c0_i32_0 = arith.constant 0 : i32
    %c0_i32_1 = arith.constant 0 : i32
    return %c0_i32, %c0_i32_0 : i32, i32
  }
  func.func @transform_1(%arg0: i32) -> (i32, i32) {
    %c0_i32 = arith.constant 0 : i32
    %c0_i32_0 = arith.constant 0 : i32
    return %arg0, %c0_i32 : i32, i32
  }
}

module attributes {stable_mosaic.version = 11 : i64} {
  func.func @_broadcast_kernel(%arg0: i32, %arg1: memref<1x512xf32, #tpu.memory_space<vmem>>, %arg2: memref<8x512xf32, #tpu.memory_space<vmem>>) attributes {dimension_semantics = [#tpu.dimension_semantics<parallel>], iteration_bounds = array<i64: 1>, scalar_prefetch = 0 : i64, scratch_operands = 0 : i64, tpu.core_type = #tpu.core_type<tc>, window_params = [{pipeline_mode = #tpu.pipeline_mode<synchronous>, transform_indices = @transform_0, window_bounds = array<i64: 1, 512>}, {transform_indices = @transform_1, window_bounds = array<i64: 8, 512>}]} {
    %c0 = arith.constant 0 : index
    %c0_0 = arith.constant 0 : index
    %0 = vector.load %arg1[%c0, %c0_0] : memref<1x512xf32, #tpu.memory_space<vmem>>, vector<1x512xf32>
    %1 = vector.shape_cast %0 : vector<1x512xf32> to vector<1x512xf32>
    %2 = vector.broadcast %1 : vector<1x512xf32> to vector<8x512xf32>
    %c0_1 = arith.constant 0 : index
    %c0_2 = arith.constant 0 : index
    %3 = vector.load %arg2[%c0_1, %c0_2] : memref<8x512xf32, #tpu.memory_space<vmem>>, vector<8x512xf32>
    tpu.vector_store %arg2[%c0_1, %c0_2], %2 {strides = array<i32>} : memref<8x512xf32, #tpu.memory_space<vmem>>, vector<8x512xf32>,
    return
  }
  func.func @transform_0(%arg0: i32) -> (i32, i32) {
    %c0_i32 = arith.constant 0 : i32
    %c0_i32_0 = arith.constant 0 : i32
    %c0_i32_1 = arith.constant 0 : i32
    return %c0_i32, %c0_i32_0 : i32, i32
  }
  func.func @transform_1(%arg0: i32) -> (i32, i32) {
    %c0_i32 = arith.constant 0 : i32
    %c0_i32_0 = arith.constant 0 : i32
    return %arg0, %c0_i32 : i32, i32
  }
}

</mosaic_0001>

<bundles_post_ra>
// kernel: tpu_custom_call.1
= control target key start
LH: loop header
LB: loop body
LE: loop exit
PB: predicated region body
PF: predicated region fallthrough
CT: control target
= control target key end

     0   :  { %6 = vsyncpa [#allocation3], 0  ;;  %s148_s0 = inlined_call_operand.hbm [shape: f32[1,512], index: 0, kind: input, shape index: {}]   ;;  %s149_s1 = inlined_call_operand.hbm [shape: f32[8,512], index: 1, kind: output, shape index: {}]  }
   0x1   :  { %7 = vsyncpa [#allocation4], 0  ;;  %s112_s6 = smov [#allocation2]   ;;  %s64_s10 = scalar_lea.hbm %s148_s0, 64 }
   0x2   :  { %s14_s7 = sshll.u32 %s112_s6, 4  ;;  %p65_p0 = scmp.ne.s32.totalorder %s148_s0, %s64_s10  ;;  %s15_s7 = int_to_ptr.vmem [resolvable:$true] %s14_s7 }
   0x3   :  { %p68_p1 = scmp.lt.u32.totalorder %s64_s10, %s148_s0 }
   0x5   :  { %p70_p2 = pnand %p68_p1, %p65_p0 }
   0x7   :  { %73 = shalt.err (!%p70_p2)
}
   0x8   :  { %s74_s15 = scalar_lea.vmem %s15_s7, 64  ;;  %p79_p4 = scmp.lt.s32.totalorder %s15_s7, %s15_s7 }
   0x9   :  { %p75_p3 = scmp.ne.s32.totalorder %s15_s7, %s74_s15  ;;  %p80_p5 = scmp.lt.s32.totalorder %s74_s15, %s74_s15 }
   0xb   :  { %p81_p6 = por %p80_p5, %p79_p4 }
   0xd   :  { %p82_p7 = pnand %p81_p6, %p75_p3 }
   0xf   :  { %85 = shalt.err (!%p82_p7)
}
  0x10   :  { %17 = dma.hbm_to_vmem [thread:$0]  %s148_s0, 64, %s15_s7, [#allocation3]  }
  0x11   :  { %108 = dma.done.wait [#allocation3], 64  }
  0x12   :  { %109 = vsyncadd [#allocation3], 4294967232  ;;  %v23_v0 = vlaneseq  ;;  %s113_s18 = smov [#allocation5]   ;;  %v21_v6 = vld [vmem:[#allocation2] sm:$0xf] }
  0x13   :  { %s53_s19 = sshll.u32 %s113_s18, 4  ;;  %s54_s19 = int_to_ptr.vmem [resolvable:$true] %s53_s19 }
  0x14   :  { %v24_v1 = vshrl.u32 %v23_v0, 7  ;;  %s86_s0 = scalar_lea.vmem %s54_s19, 512  ;;  %p91_p9 = scmp.lt.s32.totalorder %s54_s19, %s54_s19 }
  0x15   :  { %p87_p8 = scmp.ne.s32.totalorder %s54_s19, %s86_s0  ;;  %p92_p10 = scmp.lt.s32.totalorder %s86_s0, %s86_s0 }
  0x16   :  { %v25_v2 = vsub.s32 0, %v24_v1  ;;  %v29_v3 = vsub.s32 1, %v24_v1  ;;  %v33_v4 = vsub.s32 2, %v24_v1  ;;  %v37_v5 = vsub.s32 3, %v24_v1 }
  0x17   :  { %p93_p11 = por %p92_p10, %p91_p9 }
  0x18   :  { %v26_v7 = vrot.slane %v21_v6, %v25_v2  ;;  %v30_v8 = vrot.slane %v21_v6, %v29_v3  ;;  %v34_v9 = vrot.slane %v21_v6, %v33_v4  ;;  %v38_v10 = vrot.slane %v21_v6, %v37_v5 }
  0x19   :  { %p94_p12 = pnand %p93_p11, %p87_p8 }
  0x1a   :  { %43 = vst [vmem:[#allocation5] sm:$0xff] %v26_v7  ;;  %44 = vst [vmem:[#allocation5 + $0x8] sm:$0xff] %v30_v8 }
  0x1b   :  { %45 = vst [vmem:[#allocation5 + $0x10] sm:$0xff] %v34_v9  ;;  %46 = vst [vmem:[#allocation5 + $0x18] sm:$0xff] %v38_v10 }
  0x1c   :  { %97 = shalt.err (!%p94_p12)
}
  0x1d   :  { %s98_s22 = scalar_lea.hbm %s149_s1, 512 }
  0x1e   :  { %p99_p13 = scmp.ne.s32.totalorder %s149_s1, %s98_s22  ;;  %p102_p0 = scmp.lt.u32.totalorder %s98_s22, %s149_s1 }
  0x20   :  { %p104_p1 = pnand %p102_p0, %p99_p13 }
  0x22   :  { %107 = shalt.err (!%p104_p1)
}
  0x23   :  { %56 = dma.vmem_to_hbm [thread:$0]  %s54_s19, 512, %s149_s1, [#allocation4]  }
  0x24   :  { %110 = dma.done.wait [#allocation4], 512  }
  0x25   :  { %111 = vsyncadd [#allocation4], 4294966784 }
  0x26   :  { %60 = vsyncpa [#allocation3], 1 }
  0x27   :  { %61 = vsyncpa [#allocation4], 1 }

// kernel: tpu_custom_call.1
= control target key start
LH: loop header
LB: loop body
LE: loop exit
PB: predicated region body
PF: predicated region fallthrough
CT: control target
= control target key end

     0   :  { %6 = vsyncpa [#allocation3], 0  ;;  %s148_s0 = inlined_call_operand.hbm [shape: f32[1,512], index: 0, kind: input, shape index: {}]   ;;  %s149_s1 = inlined_call_operand.hbm [shape: f32[8,512], index: 1, kind: output, shape index: {}]  }
   0x1   :  { %7 = vsyncpa [#allocation4], 0  ;;  %s112_s6 = smov [#allocation2]   ;;  %s64_s10 = scalar_lea.hbm %s148_s0, 64 }
   0x2   :  { %s14_s7 = sshll.u32 %s112_s6, 4  ;;  %p65_p0 = scmp.ne.s32.totalorder %s148_s0, %s64_s10  ;;  %s15_s7 = int_to_ptr.vmem [resolvable:$true] %s14_s7 }
   0x3   :  { %p68_p1 = scmp.lt.u32.totalorder %s64_s10, %s148_s0 }
   0x5   :  { %p70_p2 = pnand %p68_p1, %p65_p0 }
   0x7   :  { %73 = shalt.err (!%p70_p2)
}
   0x8   :  { %s74_s15 = scalar_lea.vmem %s15_s7, 64  ;;  %p79_p4 = scmp.lt.s32.totalorder %s15_s7, %s15_s7 }
   0x9   :  { %p75_p3 = scmp.ne.s32.totalorder %s15_s7, %s74_s15  ;;  %p80_p5 = scmp.lt.s32.totalorder %s74_s15, %s74_s15 }
   0xb   :  { %p81_p6 = por %p80_p5, %p79_p4 }
   0xd   :  { %p82_p7 = pnand %p81_p6, %p75_p3 }
   0xf   :  { %85 = shalt.err (!%p82_p7)
}
  0x10   :  { %17 = dma.hbm_to_vmem [thread:$0]  %s148_s0, 64, %s15_s7, [#allocation3]  }
  0x11   :  { %108 = dma.done.wait [#allocation3], 64  }
  0x12   :  { %109 = vsyncadd [#allocation3], 4294967232  ;;  %v23_v0 = vlaneseq  ;;  %s113_s18 = smov [#allocation5]   ;;  %v21_v6 = vld [vmem:[#allocation2] sm:$0xf] }
  0x13   :  { %s53_s19 = sshll.u32 %s113_s18, 4  ;;  %s54_s19 = int_to_ptr.vmem [resolvable:$true] %s53_s19 }
  0x14   :  { %v24_v1 = vshrl.u32 %v23_v0, 7  ;;  %s86_s0 = scalar_lea.vmem %s54_s19, 512  ;;  %p91_p9 = scmp.lt.s32.totalorder %s54_s19, %s54_s19 }
  0x15   :  { %p87_p8 = scmp.ne.s32.totalorder %s54_s19, %s86_s0  ;;  %p92_p10 = scmp.lt.s32.totalorder %s86_s0, %s86_s0 }
  0x16   :  { %v25_v2 = vsub.s32 0, %v24_v1  ;;  %v29_v3 = vsub.s32 1, %v24_v1  ;;  %v33_v4 = vsub.s32 2, %v24_v1  ;;  %v37_v5 = vsub.s32 3, %v24_v1 }
  0x17   :  { %p93_p11 = por %p92_p10, %p91_p9 }
  0x18   :  { %v26_v7 = vrot.slane %v21_v6, %v25_v2  ;;  %v30_v8 = vrot.slane %v21_v6, %v29_v3  ;;  %v34_v9 = vrot.slane %v21_v6, %v33_v4  ;;  %v38_v10 = vrot.slane %v21_v6, %v37_v5 }
  0x19   :  { %p94_p12 = pnand %p93_p11, %p87_p8 }
  0x1a   :  { %43 = vst [vmem:[#allocation5] sm:$0xff] %v26_v7  ;;  %44 = vst [vmem:[#allocation5 + $0x8] sm:$0xff] %v30_v8 }
  0x1b   :  { %45 = vst [vmem:[#allocation5 + $0x10] sm:$0xff] %v34_v9  ;;  %46 = vst [vmem:[#allocation5 + $0x18] sm:$0xff] %v38_v10 }
  0x1c   :  { %97 = shalt.err (!%p94_p12)
}
  0x1d   :  { %s98_s22 = scalar_lea.hbm %s149_s1, 512 }
  0x1e   :  { %p99_p13 = scmp.ne.s32.totalorder %s149_s1, %s98_s22  ;;  %p102_p0 = scmp.lt.u32.totalorder %s98_s22, %s149_s1 }
  0x20   :  { %p104_p1 = pnand %p102_p0, %p99_p13 }
  0x22   :  { %107 = shalt.err (!%p104_p1)
}
  0x23   :  { %56 = dma.vmem_to_hbm [thread:$0]  %s54_s19, 512, %s149_s1, [#allocation4]  }
  0x24   :  { %110 = dma.done.wait [#allocation4], 512  }
  0x25   :  { %111 = vsyncadd [#allocation4], 4294966784 }
  0x26   :  { %60 = vsyncpa [#allocation3], 1 }
  0x27   :  { %61 = vsyncpa [#allocation4], 1 }

</bundles_post_ra>
